<compile_context>
chip_gen: v5e
topology: v5e:2x2
jax: 0.10.0
libtpu: 0.0.40
codegen_flags: <defaults>
</compile_context>

<pallas_src>
import functools

import jax
import jax.numpy as jnp
from jax import lax
from jax.experimental import pallas as pl
from jax.experimental.pallas import tpu as pltpu


def _leaky(x):
    return jnp.where(x > 0, x, 0.2 * x)


def _resnet_block_kernel(x_ref, halo_ref, wA_ref, b1_ref, wB_ref, bout_ref,
                         o_ref, *, dilation, tile_t):
    # x_ref:    (1, tT, C)     f32 input tile (also the shortcut input)
    # halo_ref: (1, 1, 2d, C)  f32 reflection/neighbour halo rows for this tile
    # wA_ref:   (3C, C)        bf16 fused taps of the dilated k=3 conv (Cin-major)
    # b1_ref:   (1, C)         f32 bias of the k=3 conv
    # wB_ref:   (2C, C)        bf16 [w2 ; w_shortcut] stacked along Cin
    # bout_ref: (1, C)         f32 (b2 + b_shortcut)
    d = dilation
    x = x_ref[0]                                   # (tT, C) f32
    halo = halo_ref[0, 0]                          # (2d, C) f32

    # padded window for this tile: [front halo ; x ; back halo] -> LeakyReLU
    hp = jnp.concatenate([halo[:d], x, halo[d:]], axis=0)      # (tT + 2d, C)
    hl = _leaky(hp)

    # fused dilated 3-tap conv: concat the 3 shifted views along channels.
    a = jnp.concatenate([hl[k * d:k * d + tile_t, :] for k in range(3)],
                        axis=1).astype(jnp.bfloat16)           # (tT, 3C)
    y1 = jnp.dot(a, wA_ref[...], preferred_element_type=jnp.float32)
    y1 = y1 + b1_ref[...]                                      # (tT, C) f32

    # fused (k=1 conv after LeakyReLU) + shortcut: [leaky(y1) | x] @ [w2 ; ws]
    h2 = jnp.concatenate([_leaky(y1), x], axis=1).astype(jnp.bfloat16)  # (tT, 2C)
    out = jnp.dot(h2, wB_ref[...], preferred_element_type=jnp.float32)
    out = out + bout_ref[...]                                  # block(x) + shortcut(x)

    o_ref[0] = out.astype(o_ref.dtype)


def _pick_tile_t(T, C, d):
    """Largest time-tile that divides T, is sublane-aligned, >= d, and keeps
    the f32 working set comfortably inside v7x's 64 MiB VMEM."""
    budget_rows = max(8, (24 * 1024 * 1024) // (12 * C * 4))
    if T <= budget_rows:
        return T
    tt = (budget_rows // 8) * 8
    while tt >= 8:
        if T % tt == 0 and tt >= d:
            return tt
        tt -= 8
    return T                       # fall back to a single tile per batch item


def resnet_block_forward(x_ncw, params, dilation, tile_t=None):
    """x_ncw: (B, C, T) float32, PyTorch NCW layout. Returns (B, C, T)."""
    w1, b1, w2, b2, ws, bs = params
    B, C, T = x_ncw.shape
    d = int(dilation)
    if T <= d:
        raise ValueError("reflection pad requires T > dilation")

    if tile_t is None:
        tile_t = _pick_tile_t(T, C, d)
    nT = T // tile_t

    # channels-last for the kernel (C on the lane axis is the matmul contraction).
    # TODO(synk): an NCW-native variant would also drop these two wrapper
    # transposes (one HBM pass each) when T is a large multiple of 128.
    x_btc = jnp.transpose(x_ncw, (0, 2, 1))                    # (B, T, C)

    # Per-tile halo rows (d before, d after the tile), reflecting at the global
    # edges -- a tiny gather instead of a full padded copy of x in HBM.
    j = jnp.arange(d)
    t = jnp.arange(nT)
    front = jnp.where(t[:, None] == 0,
                      d - j[None, :],
                      t[:, None] * tile_t - d + j[None, :])
    back = jnp.where(t[:, None] == nT - 1,
                     T - 2 - j[None, :],
                     (t[:, None] + 1) * tile_t + j[None, :])
    halo_idx = jnp.concatenate([front, back], axis=1).reshape(-1)       # (nT*2d,)
    halo = jnp.take(x_btc, halo_idx, axis=1).reshape(B, nT, 2 * d, C)

    # Effective weights: fused, pre-transposed to (Cin, Cout), bf16 for the MXU.
    wA = jnp.transpose(w1, (2, 1, 0)).reshape(3 * C, C).astype(jnp.bfloat16)
    wB = jnp.concatenate([jnp.transpose(w2[:, :, 0], (1, 0)),
                          jnp.transpose(ws[:, :, 0], (1, 0))],
                         axis=0).astype(jnp.bfloat16)          # (2C, C)
    b1_2d = b1.reshape(1, C).astype(jnp.float32)
    bout_2d = (b2 + bs).reshape(1, C).astype(jnp.float32)

    kernel = functools.partial(_resnet_block_kernel, dilation=d, tile_t=tile_t)

    flops = int(2 * B * T * 5 * C * C)             # 3 taps + k=1 conv + shortcut
    bytes_accessed = int((2 * B * T * C + B * nT * 2 * d * C) * 4
                         + 5 * C * C * 2 + 2 * C * 4)
    cost = pl.CostEstimate(flops=flops, transcendentals=0,
                           bytes_accessed=bytes_accessed)

    tile_bytes = tile_t * C * 4
    vmem_need = (10 * tile_bytes                   # in/out double buffers + temps
                 + 4 * 2 * d * C * 4               # halo double buffers
                 + 2 * 5 * C * C                   # bf16 resident weights
                 + (1 << 20))                      # headroom
    vmem_limit = int(min(48 * 1024 * 1024, max(2 * vmem_need, 16 * 1024 * 1024)))

    out_btc = pl.pallas_call(
        kernel,
        out_shape=jax.ShapeDtypeStruct((B, T, C), x_ncw.dtype),
        grid=(B, nT),
        in_specs=[
            pl.BlockSpec((1, tile_t, C), lambda b, t: (b, t, 0)),
            pl.BlockSpec((1, 1, 2 * d, C), lambda b, t: (b, t, 0, 0)),
            pl.BlockSpec((3 * C, C), lambda b, t: (0, 0)),
            pl.BlockSpec((1, C), lambda b, t: (0, 0)),
            pl.BlockSpec((2 * C, C), lambda b, t: (0, 0)),
            pl.BlockSpec((1, C), lambda b, t: (0, 0)),
        ],
        out_specs=pl.BlockSpec((1, tile_t, C), lambda b, t: (b, t, 0)),
        compiler_params=pltpu.CompilerParams(
            dimension_semantics=("parallel", "parallel"),
            vmem_limit_bytes=vmem_limit),
        cost_estimate=cost,
    )(x_btc, halo, wA, b1_2d, wB, bout_2d)

    return jnp.transpose(out_btc, (0, 2, 1))                   # back to (B, C, T)


# ---------------- parameter construction (weight norm, deterministic) --------

def _weight_norm(v, g):
    # PyTorch weight_norm default dim=0: norm over (in_channels, kernel) per out channel
    nrm = jnp.sqrt(jnp.sum(v * v, axis=(1, 2), keepdims=True))
    return g[:, None, None] * v / nrm


def make_params(key, dim):
    ks = jax.random.split(key, 9)
    v1 = jax.random.normal(ks[0], (dim, dim, 3), jnp.float32) * 0.1
    g1 = 1.0 + 0.1 * jax.random.normal(ks[1], (dim,), jnp.float32)
    b1 = 0.1 * jax.random.normal(ks[2], (dim,), jnp.float32)
    v2 = jax.random.normal(ks[3], (dim, dim, 1), jnp.float32) * 0.1
    g2 = 1.0 + 0.1 * jax.random.normal(ks[4], (dim,), jnp.float32)
    b2 = 0.1 * jax.random.normal(ks[5], (dim,), jnp.float32)
    vs = jax.random.normal(ks[6], (dim, dim, 1), jnp.float32) * 0.1
    gs = 1.0 + 0.1 * jax.random.normal(ks[7], (dim,), jnp.float32)
    bs = 0.1 * jax.random.normal(ks[8], (dim,), jnp.float32)
    return (_weight_norm(v1, g1), b1,
            _weight_norm(v2, g2), b2,
            _weight_norm(vs, gs), bs)


# ---------------- plain-JAX reference (mirrors the PyTorch forward) ----------

def reference_forward(x_ncw, params, dilation):
    w1, b1, w2, b2, ws, bs = params
    d = int(dilation)
    dn = ("NCH", "OIH", "NCH")

    h = _leaky(x_ncw)
    h = jnp.pad(h, ((0, 0), (0, 0), (d, d)), mode="reflect")
    y1 = lax.conv_general_dilated(h, w1, window_strides=(1,), padding="VALID",
                                  rhs_dilation=(d,), dimension_numbers=dn)
    y1 = y1 + b1[None, :, None]
    h2 = _leaky(y1)
    y2 = lax.conv_general_dilated(h2, w2, window_strides=(1,), padding="VALID",
                                  dimension_numbers=dn) + b2[None, :, None]
    sc = lax.conv_general_dilated(x_ncw, ws, window_strides=(1,), padding="VALID",
                                  dimension_numbers=dn) + bs[None, :, None]
    return sc + y2


if __name__ == "__main__":
    B, dim, T, dilation = 2, 32, 16, 2

    key = jax.random.PRNGKey(0)
    kx, kp = jax.random.split(key)
    x = jax.random.normal(kx, (B, dim, T), jnp.float32)
    params = make_params(kp, dim)

    out = jax.block_until_ready(resnet_block_forward(x, params, dilation))
    ref = jax.block_until_ready(reference_forward(x, params, dilation))

    assert out.shape == (B, dim, T)
    err = float(jnp.max(jnp.abs(out - ref)))
    # bf16 matmul operands (f32 accumulation) vs. a pure-f32 reference.
    assert err < 5e-2, f"max abs err {err}"

    print("KERNEL_OK")
</pallas_src>

<mosaic_0001>
module attributes {stable_mosaic.version = 11 : i64} {
  func.func @_resnet_block_kernel(%arg0: i32, %arg1: i32, %arg2: memref<1x16x32xf32, #tpu.memory_space<vmem>>, %arg3: memref<1x1x4x32xf32, #tpu.memory_space<vmem>>, %arg4: memref<96x32xbf16, #tpu.memory_space<vmem>>, %arg5: memref<1x32xf32, #tpu.memory_space<vmem>>, %arg6: memref<64x32xbf16, #tpu.memory_space<vmem>>, %arg7: memref<1x32xf32, #tpu.memory_space<vmem>>, %arg8: memref<1x16x32xf32, #tpu.memory_space<vmem>>) attributes {dimension_semantics = [#tpu.dimension_semantics<parallel>, #tpu.dimension_semantics<parallel>], iteration_bounds = array<i64: 2, 1>, scalar_prefetch = 0 : i64, scratch_operands = 0 : i64, tpu.core_type = #tpu.core_type<tc>, window_params = [{transform_indices = @transform_0, window_bounds = array<i64: 1, 16, 32>}, {transform_indices = @transform_1, window_bounds = array<i64: 1, 1, 4, 32>}, {pipeline_mode = #tpu.pipeline_mode<synchronous>, transform_indices = @transform_2, window_bounds = array<i64: 96, 32>}, {pipeline_mode = #tpu.pipeline_mode<synchronous>, transform_indices = @transform_3, window_bounds = array<i64: 1, 32>}, {pipeline_mode = #tpu.pipeline_mode<synchronous>, transform_indices = @transform_4, window_bounds = array<i64: 64, 32>}, {pipeline_mode = #tpu.pipeline_mode<synchronous>, transform_indices = @transform_5, window_bounds = array<i64: 1, 32>}, {transform_indices = @transform_6, window_bounds = array<i64: 1, 16, 32>}]} {
    %c0 = arith.constant 0 : index
    %c0_0 = arith.constant 0 : index
    %c0_1 = arith.constant 0 : index
    %0 = vector.load %arg2[%c0, %c0_0, %c0_1] : memref<1x16x32xf32, #tpu.memory_space<vmem>>, vector<1x16x32xf32>
    %1 = vector.shape_cast %0 : vector<1x16x32xf32> to vector<16x32xf32>
    %c0_2 = arith.constant 0 : index
    %c0_3 = arith.constant 0 : index
    %c0_4 = arith.constant 0 : index
    %c0_5 = arith.constant 0 : index
    %2 = vector.load %arg3[%c0_2, %c0_3, %c0_4, %c0_5] : memref<1x1x4x32xf32, #tpu.memory_space<vmem>>, vector<1x1x4x32xf32>
    %3 = vector.shape_cast %2 : vector<1x1x4x32xf32> to vector<4x32xf32>
    %4 = vector.extract_strided_slice %3 {offsets = [0, 0], sizes = [2, 32], strides = [1, 1]} : vector<4x32xf32> to vector<2x32xf32>
    %5 = vector.extract_strided_slice %3 {offsets = [2, 0], sizes = [2, 32], strides = [1, 1]} : vector<4x32xf32> to vector<2x32xf32>
    %6 = tpu.concatenate %4, %1, %5 in 0 : vector<2x32xf32>, vector<16x32xf32>, vector<2x32xf32> -> vector<20x32xf32>
    %cst = arith.constant 0.000000e+00 : f32
    %7 = vector.broadcast %cst : f32 to vector<20x32xf32>
    %8 = arith.cmpf ogt, %6, %7 : vector<20x32xf32>
    %cst_6 = arith.constant 2.000000e-01 : f32
    %9 = vector.broadcast %cst_6 : f32 to vector<20x32xf32>
    %10 = arith.mulf %9, %6 : vector<20x32xf32>
    %11 = arith.select %8, %6, %10 : vector<20x32xi1>, vector<20x32xf32>
    %12 = vector.extract_strided_slice %11 {offsets = [0, 0], sizes = [16, 32], strides = [1, 1]} : vector<20x32xf32> to vector<16x32xf32>
    %13 = vector.extract_strided_slice %11 {offsets = [2, 0], sizes = [16, 32], strides = [1, 1]} : vector<20x32xf32> to vector<16x32xf32>
    %14 = vector.extract_strided_slice %11 {offsets = [4, 0], sizes = [16, 32], strides = [1, 1]} : vector<20x32xf32> to vector<16x32xf32>
    %15 = tpu.concatenate %12, %13, %14 in 1 : vector<16x32xf32>, vector<16x32xf32>, vector<16x32xf32> -> vector<16x96xf32>
    %16 = arith.truncf %15 : vector<16x96xf32> to vector<16x96xbf16>
    %c0_7 = arith.constant 0 : index
    %c0_8 = arith.constant 0 : index
    %17 = vector.load %arg4[%c0_7, %c0_8] : memref<96x32xbf16, #tpu.memory_space<vmem>>, vector<96x32xbf16>
    %cst_9 = arith.constant dense<0.000000e+00> : vector<16x32xf32>
    %18 = tpu.matmul %16, %17, %cst_9 {dimension_numbers = #tpu.dot_dimension_numbers<[1], [0], [0], [1], [0, 0, 1, 1], [], []>} : vector<16x96xbf16>, vector<96x32xbf16>, vector<16x32xf32> -> vector<16x32xf32>
    %c0_10 = arith.constant 0 : index
    %c0_11 = arith.constant 0 : index
    %19 = vector.load %arg5[%c0_10, %c0_11] : memref<1x32xf32, #tpu.memory_space<vmem>>, vector<1x32xf32>
    %20 = vector.broadcast %19 : vector<1x32xf32> to vector<16x32xf32>
    %21 = arith.addf %18, %20 : vector<16x32xf32>
    %cst_12 = arith.constant 0.000000e+00 : f32
    %22 = vector.broadcast %cst_12 : f32 to vector<16x32xf32>
    %23 = arith.cmpf ogt, %21, %22 : vector<16x32xf32>
    %cst_13 = arith.constant 2.000000e-01 : f32
    %24 = vector.broadcast %cst_13 : f32 to vector<16x32xf32>
    %25 = arith.mulf %24, %21 : vector<16x32xf32>
    %26 = arith.select %23, %21, %25 : vector<16x32xi1>, vector<16x32xf32>
    %27 = tpu.concatenate %26, %1 in 1 : vector<16x32xf32>, vector<16x32xf32> -> vector<16x64xf32>
    %28 = arith.truncf %27 : vector<16x64xf32> to vector<16x64xbf16>
    %c0_14 = arith.constant 0 : index
    %c0_15 = arith.constant 0 : index
    %29 = vector.load %arg6[%c0_14, %c0_15] : memref<64x32xbf16, #tpu.memory_space<vmem>>, vector<64x32xbf16>
    %cst_16 = arith.constant dense<0.000000e+00> : vector<16x32xf32>
    %30 = tpu.matmul %28, %29, %cst_16 {dimension_numbers = #tpu.dot_dimension_numbers<[1], [0], [0], [1], [0, 0, 1, 1], [], []>} : vector<16x64xbf16>, vector<64x32xbf16>, vector<16x32xf32> -> vector<16x32xf32>
    %c0_17 = arith.constant 0 : index
    %c0_18 = arith.constant 0 : index
    %31 = vector.load %arg7[%c0_17, %c0_18] : memref<1x32xf32, #tpu.memory_space<vmem>>, vector<1x32xf32>
    %32 = vector.broadcast %31 : vector<1x32xf32> to vector<16x32xf32>
    %33 = arith.addf %30, %32 : vector<16x32xf32>
    %c0_19 = arith.constant 0 : index
    %c0_20 = arith.constant 0 : index
    %c0_21 = arith.constant 0 : index
    %34 = vector.load %arg8[%c0_19, %c0_20, %c0_21] : memref<1x16x32xf32, #tpu.memory_space<vmem>>, vector<1x16x32xf32>
    %35 = vector.shape_cast %34 : vector<1x16x32xf32> to vector<16x32xf32>
    %36 = vector.shape_cast %33 : vector<16x32xf32> to vector<1x16x32xf32>
    tpu.vector_store %arg8[%c0_19, %c0_20, %c0_21], %36 {strides = array<i32>} : memref<1x16x32xf32, #tpu.memory_space<vmem>>, vector<1x16x32xf32>,
    return
  }
  func.func @transform_0(%arg0: i32, %arg1: i32) -> (i32, i32, i32) {
    %c0_i32 = arith.constant 0 : i32
    %c0_i32_0 = arith.constant 0 : i32
    return %arg0, %arg1, %c0_i32 : i32, i32, i32
  }
  func.func @transform_1(%arg0: i32, %arg1: i32) -> (i32, i32, i32, i32) {
    %c0_i32 = arith.constant 0 : i32
    %c0_i32_0 = arith.constant 0 : i32
    %c0_i32_1 = arith.constant 0 : i32
    return %arg0, %arg1, %c0_i32, %c0_i32_0 : i32, i32, i32, i32
  }
  func.func @transform_2(%arg0: i32, %arg1: i32) -> (i32, i32) {
    %c0_i32 = arith.constant 0 : i32
    %c0_i32_0 = arith.constant 0 : i32
    %c0_i32_1 = arith.constant 0 : i32
    return %c0_i32, %c0_i32_0 : i32, i32
  }
  func.func @transform_3(%arg0: i32, %arg1: i32) -> (i32, i32) {
    %c0_i32 = arith.constant 0 : i32
    %c0_i32_0 = arith.constant 0 : i32
    %c0_i32_1 = arith.constant 0 : i32
    return %c0_i32, %c0_i32_0 : i32, i32
  }
  func.func @transform_4(%arg0: i32, %arg1: i32) -> (i32, i32) {
    %c0_i32 = arith.constant 0 : i32
    %c0_i32_0 = arith.constant 0 : i32
    %c0_i32_1 = arith.constant 0 : i32
    return %c0_i32, %c0_i32_0 : i32, i32
  }
  func.func @transform_5(%arg0: i32, %arg1: i32) -> (i32, i32) {
    %c0_i32 = arith.constant 0 : i32
    %c0_i32_0 = arith.constant 0 : i32
    %c0_i32_1 = arith.constant 0 : i32
    return %c0_i32, %c0_i32_0 : i32, i32
  }
  func.func @transform_6(%arg0: i32, %arg1: i32) -> (i32, i32, i32) {
    %c0_i32 = arith.constant 0 : i32
    %c0_i32_0 = arith.constant 0 : i32
    return %arg0, %arg1, %c0_i32 : i32, i32, i32
  }
}

</mosaic_0001>

<bundles_post_ra>
// kernel: tpu_custom_call.1
= control target key start
LH: loop header
LB: loop body
LE: loop exit
PB: predicated region body
PF: predicated region fallthrough
CT: control target
= control target key end

     0   :  { %11 = vsyncpa [#allocation3], 0  ;;  %s1027_s0 = inlined_call_operand.vmem [shape: f32[2,16,32], index: 0, kind: input, shape index: {}]   ;;  %s1028_s1 = inlined_call_operand.vmem [shape: f32[2,1,4,32], index: 1, kind: input, shape index: {}]   ;;  %s1029_s2 = inlined_call_operand.vmem [shape: bf16[96,32], index: 2, kind: input, shape index: {}]   ;;  %s1030_s3 = inlined_call_operand.vmem [shape: f32[1,32], index: 3, kind: input, shape index: {}]   ;;  %s1031_s4 = inlined_call_operand.vmem [shape: bf16[64,32], index: 4, kind: input, shape index: {}]   ;;  %s1032_s5 = inlined_call_operand.vmem [shape: f32[1,32], index: 5, kind: input, shape index: {}]   ;;  %s1033_s6 = inlined_call_operand.hbm [shape: f32[2,16,32], index: 6, kind: output, shape index: {}]  }
   0x1   :  { %13 = vsyncpa [#allocation3 + $0x1], 0  ;;  %s882_s21 = smov 0   ;;  %s884_s22 = smov 0  }
   0x2   :  { %s886_s23 = smov 0   ;;  %s888_s24 = smov 0  }
   0x3   :  { %s890_s25 = smov 0   ;;  %s892_s26 = smov 0  }
   0x4 LB: > { %s619_s27 = sadd.s32 4294967295, %s841_s26   ;;  %s620_s28 = sadd.s32 4294967294, %s841_s26   ;;  %s841_s26 = sphi %s892_s26, %s19_s26   ;;  %s837_s25 = sphi %s890_s25, %s1043_s25   ;;  %s833_s24 = sphi %s888_s24, %s1042_s24   ;;  %s829_s23 = sphi %s886_s23, %s1041_s23   ;;  %s825_s22 = sphi %s884_s22, %s1040_s22   ;;  %s821_s21 = sphi %s882_s21, %s1039_s21  }
   0x5   : > { %s31_s29 = sadd.s32 1, %s837_s25  ;;  %s180_s30 = sadd.s32 1, %s829_s23 }
   0x6   : > { %p33_p0 = scmp.ge.s32.totalorder %s31_s29, 2  ;;  %p190_p1 = scmp.ne.s32.totalorder %s829_s23, %s825_s22 }
   0x7   : > { %p191_p2 = scmp.eq.s32.totalorder %s619_s27, 1  ;;  %p196_p3 = scmp.ne.s32.totalorder %s825_s22, %s821_s21 }
   0x8   : > { %s1045_s29 = smov (%p33_p0, %s31_s29), 0  ;;  %p197_p5 = scmp.eq.s32.totalorder %s620_s28, 1 }
   0x9   : > { %1035 = sst [smem:[#allocation5_spill]] %s1045_s29  ;;  %p922_p4 = por %p191_p2, %p190_p1 }
   0xa   : > { %s175_s8 = ssub.s32 %s837_s25, %s1045_s29  ;;  %p623_p6 = scmp.ge.s32.totalorder %s841_s26, 1 }
   0xb   : > { %p178_p7 = scmp.eq.s32.totalorder %s175_s8, 0  ;;  %p929_p8 = por %p197_p5, %p196_p3 }
   0xc   : > { %p250_p9 = scmp.lt.s32.totalorder %s841_s26, 3 }
   0xd   : > { %s935_s10 = scalar_select %p178_p7, %s829_s23, %s180_s30  }
   0xe   : > { %p251_p10 = pnand %p623_p6, %p250_p9 }
   0xf   : > { %p292_p11 = scmp.lt.s32.totalorder (!%p251_p10), %s833_s24, 1  ;;  %s843_s29 = smov (!%p251_p10), 32  }
  0x10   : > { %254 = sbr.rel (%p251_p10) target bundleno = 448 (0x1c0), region = 44  ;;  %s844_s11 = smov (!%p251_p10), 64  }
  0x15   : > { %v681_v0 = vld [vmem:[%s1029_s2 + $0x28] sm:$0xff]  ;;  %s293_s13 = scalar_select %p292_p11, %s833_s24, 1  ;;  %v680_v1 = vld [vmem:[%s1029_s2 + $0x20] sm:$0xff]  ;;  %v679_v2 = vld [vmem:[%s1029_s2 + $0x18] sm:$0xff]  ;;  %vm315_vm0 = vcmask 1041408   ;;  %vm336_vm4 = vcmask 1045504  }
  0x16   : > { %425 = vmatpush.bf16.msra.mxu0 %v681_v0  ;;  %vm348_vm5 = vcmask 1043456   ;;  %v678_v29 = vld [vmem:[%s1029_s2 + $0x10] sm:$0xff]  ;;  %v677_v30 = vld [vmem:[%s1029_s2 + $0x8] sm:$0xff]  ;;  %v676_v31 = vld [vmem:[%s1029_s2] sm:$0xff]  ;;  %vm360_vm6 = vcmask 261120   ;;  %vm363_vm7 = vcmask 523264  }
  0x17   : > { %s675_s16 = sshll.u32 %s293_s13, 4  ;;  %s627_s17 = sshll.u32 %s293_s13, 2  ;;  %vm419_vm8 = vcmask 785408   ;;  %v685_v44 = vld [vmem:[%s1031_s4 + $0x18] sm:$0xff]  ;;  %v684_v45 = vld [vmem:[%s1031_s4 + $0x10] sm:$0xff]  ;;  %v683_v46 = vld [vmem:[%s1031_s4 + $0x8] sm:$0xff] }
  0x18   : > { %s299_s20 = scalar_lea.vmem %s1027_s0, %s675_s16  ;;  %s307_s30 = scalar_lea.vmem %s1028_s1, %s627_s17  ;;  %495 = vmatpush.bf16.msra.mxu1 %v685_v44  ;;  %v682_v47 = vld [vmem:[%s1031_s4] sm:$0xff] }
  0x19   : > { %v310_v3 = vld [vmem:[%s299_s20] sm:$0xff]  ;;  %v311_v4 = vld [vmem:[%s299_s20 + $0x8] sm:$0xff]  ;;  %s288_s13 = sand.u32 1, %s825_s22   ;;  %s686_s17 = sshll.u32 %s833_s24, 4 }
  0x1a   : > { %v312_v5 = vld [vmem:[%s307_s30] sm:$0xf]  ;;  %426 = vmatpush.bf16.msra.mxu0 %v680_v1  ;;  %v316_v6 = vrot.slane %v310_v3, 6  ;;  %v317_v7 = vrot.slane %v311_v4, 6  ;;  %v756_v32 = vpack.i.bf16 %v311_v4, %v310_v3  ;;  %s624_s14 = sshll.u32 %s288_s13, 4  ;;  %s521_s20 = scalar_lea.hbm %s1033_s6, %s686_s17 }
  0x1b   : > { %v761_v48 = vld [vmem:[%s1030_s3] ss:$0 sm:$0xff]  ;;  %s290_s27 = scalar_lea.vmem [#allocation2], %s624_s14  ;;  %s524_s30 = sshll.u32 %s521_s20, 4  ;;  %s525_s30 = int_to_ptr.hbm [resolvable:$true] %s524_s30 }
  0x1c   : > { %v318_v8 = vsel %vm315_vm0, %v316_v6, %v317_v7  ;;  %v322_v9 = vsel %vm315_vm0, %v312_v5, %v316_v6  ;;  %v323_v10 = vsel %vm315_vm0, %v317_v7, %v312_v5  ;;  %757 = vrot.lane.b32.xlu1 %v756_v32, %s843_s29  ;;  %496 = vmatpush.bf16.msra.mxu1 %v684_v45  ;;  %v762_v63 = vld [vmem:[%s1032_s5] ss:$0 sm:$0xff]  ;;  %s522_s28 = sshll.u32 %s290_s27, 4  ;;  %s508_s8 = scalar_lea.sflag [#allocation3], %s288_s13  ;;  %s523_s28 = int_to_ptr.vmem [resolvable:$true] %s522_s28 }
  0x1d   : > { %vm324_vm1 = vcmp.gt.f32.partialorder %v322_v9, 0.0  ;;  %vm325_vm2 = vcmp.gt.f32.partialorder %v318_v8, 0.0  ;;  %vm326_vm3 = vcmp.gt.f32.partialorder %v323_v10, 0.0  ;;  %v327_v11 = vmul.f32 0.2, %v322_v9  ;;  %s777_s24 = sshra.s32 %s525_s30, 4  ;;  %s778_s24 = int_to_ptr.hbm [resolvable:$true] %s777_s24 }
  0x1e   : > { %427 = vmatpush.bf16.msra.mxu0 %v679_v2  ;;  %v328_v12 = vmul.f32 0.2, %v318_v8  ;;  %v329_v13 = vmul.f32 0.2, %v323_v10  ;;  %s783_s14 = scalar_lea.hbm %s1033_s6, 32  ;;  %p784_p1 = scmp.lt.s32.totalorder %s778_s24, %s1033_s6 }
  0x1f   : > { %v330_v14 = vsel %vm324_vm1, %v322_v9, %v327_v11 }
  0x20   : > { %v331_v15 = vsel %vm325_vm2, %v318_v8, %v328_v12  ;;  %v332_v16 = vsel %vm326_vm3, %v323_v10, %v329_v13  ;;  %v337_v17 = vrot.slane %v330_v14, 2  ;;  %v349_v20 = vrot.slane %v330_v14, 4  ;;  %497 = vmatpush.bf16.msra.mxu1 %v683_v46 }
  0x21   : > { %v338_v18 = vrot.slane %v331_v15, 2  ;;  %v340_v19 = vrot.slane %v332_v16, 2  ;;  %v352_v23 = vrot.slane %v332_v16, 4  ;;  %v350_v24 = vrot.slane %v331_v15, 4 }
  0x22   : > { %428 = vmatpush.bf16.msra.mxu0 %v678_v29 }
  0x23   : > { %v339_v21 = vsel %vm336_vm4, %v337_v17, %v338_v18  ;;  %v341_v22 = vsel %vm336_vm4, %v338_v18, %v340_v19  ;;  %v351_v26 = vsel %vm348_vm5, %v349_v20, %v350_v24  ;;  %v353_v27 = vsel %vm348_vm5, %v350_v24, %v352_v23 }
  0x24   : > { %v746_v25 = vpack.i.bf16 %v341_v22, %v339_v21  ;;  %v751_v28 = vpack.i.bf16 %v353_v27, %v351_v26  ;;  %498 = vmatpush.bf16.msra.mxu1 %v682_v47 }
  0x26   : > { %747 = vrot.lane.b32.xlu0 %v746_v25, %s843_s29  ;;  %429 = vmatpush.bf16.msra.mxu0 %v677_v30  ;;  %s779_s29 = scalar_lea.hbm %s778_s24, 16 }
  0x27   : > { %p780_p12 = scmp.ne.s32.totalorder %s778_s24, %s779_s29  ;;  %p785_p2 = scmp.lt.s32.totalorder %s783_s14, %s779_s29 }
  0x29   : > { %p781_p13 = pnand %p780_p12, %p922_p4  ;;  %p786_p3 = por %p785_p2, %p784_p1 }
  0x2a   : > { %430 = vmatpush.bf16.msra.mxu0 %v676_v31 }
  0x2b   : > { %p782_p0 = pneg %p781_p13 }
  0x2d   : > { %p787_p5 = pnand %p786_p3, %p782_p0 }
  0x2e   : > { %752 = vrot.lane.b32.xlu0 %v751_v28, %s844_s11 }
  0x8e   : > { %v758_v52 = vpop.permute.xlu1 %757 }
  0x8f   : > { %v760_v55 = vunpack.i.h.bf16 %v758_v52  ;;  %v759_v56 = vunpack.i.l.bf16 %v758_v52 }
  0x98   : > { %v748_v33 = vpop.permute.xlu0 %747 }
  0x99   : > { %v750_v34 = vunpack.i.h.bf16 %v748_v33  ;;  %v749_v35 = vunpack.i.l.bf16 %v748_v33 }
  0x9b   : > { %v362_v39 = vsel %vm360_vm6, %v331_v15, %v750_v34  ;;  %v361_v40 = vsel %vm360_vm6, %v330_v14, %v749_v35 }
  0xa0   : > { %v753_v36 = vpop.permute.xlu0 %752 }
  0xa1   : > { %v755_v37 = vunpack.i.h.bf16 %v753_v36  ;;  %v754_v38 = vunpack.i.l.bf16 %v753_v36 }
  0xa3   : > { %v364_v41 = vsel %vm363_vm7, %v361_v40, %v754_v38  ;;  %v365_v42 = vsel %vm363_vm7, %v362_v39, %v755_v37 }
  0xa4   : > { %v366_v43 = vpack.c.bf16 %v365_v42, %v364_v41 }
  0xa6   : > { %652 = vmatmul.msk.bf16.vlgmr.msra.gmra.mxu0 %vm419_vm8, %v366_v43 }
 0x123   : > { %v432_v49 = vpop.f32.mrf.mxu0 }
 0x124   : > { %v433_v50 = vadd.f32 %v761_v48, %v432_v49 }
 0x126   : > { %v439_v51 = vmul.f32 0.2, %v433_v50  ;;  %vm437_vm9 = vcmp.gt.f32.partialorder %v433_v50, 0.0 }
 0x128   : > { %v441_v57 = vsel %vm437_vm9, %v433_v50, %v439_v51 }
 0x129   : > { %v449_v60 = vsel %vm360_vm6, %v441_v57, %v759_v56 }
 0x12b   : > { %v434_v53 = vpop.f32.mrf.mxu0 }
 0x12c   : > { %v435_v54 = vadd.f32 %v761_v48, %v434_v53 }
 0x12e   : > { %vm438_vm10 = vcmp.gt.f32.partialorder %v435_v54, 0.0  ;;  %v440_v58 = vmul.f32 0.2, %v435_v54 }
 0x130   : > { %v442_v59 = vsel %vm438_vm10, %v435_v54, %v440_v58 }
 0x131   : > { %v450_v61 = vsel %vm360_vm6, %v442_v59, %v760_v55 }
 0x132   : > { %v451_v62 = vpack.c.bf16 %v450_v61, %v449_v60 }
 0x134   : > { %669 = vmatmul.msk.bf16.vlgmr.msra.gmra.mxu1 %vm363_vm7, %v451_v62 }
 0x1b1   : > { %v500_v0 = vpop.f32.mrf.mxu1 }
 0x1b2   : > { %v501_v1 = vadd.f32 %v762_v63, %v500_v0 }
 0x1b4   : > { %505 = vst.msk [vmem:[%s290_s27] sm:$0xff] %vm360_vm6, %v501_v1 }
 0x1b9   : > { %v502_v2 = vpop.f32.mrf.mxu1 }
 0x1ba   : > { %v503_v3 = vadd.f32 %v762_v63, %v502_v2 }
 0x1bc   : > { %506 = vst.msk [vmem:[%s290_s27 + $0x8] sm:$0xff] %vm360_vm6, %v503_v3 }
 0x1bd   : > { %790 = shalt.err (!%p787_p5)
}
 0x1be   : > { %s845_s13 = smov 128   ;;  %s846_s17 = smov 8  }
 0x1bf   : > { %687 = dma.vmem_to_hbm [thread:$0]  (%p922_p4), %s523_s28, 256, %s525_s30, %s508_s8, %s845_s13, %s845_s13, %s846_s17  }
 0x1c0 PF: > { %p693_p6 = scmp.ge.s32.totalorder %s841_s26, 2  ;;  %s539_s18 = sand.u32 1, %s821_s21  }
 0x1c1   : > { %s540_s19 = scalar_lea.sflag [#allocation3], %s539_s18 }
 0x1c2   : > { %p690_p7 = pnand %p693_p6, %p929_p8 }
 0x1c4   : > { %p691_p9 = pneg %p690_p7 }
 0x1c6   : > { %816 = dma.done.wait (%p691_p9), %s540_s19, 256  }
 0x1c7   : > { %818 = vsyncadd (%p691_p9), %s540_s19, 4294967040  ;;  %s19_s26 = sadd.s32 1, %s841_s26   ;;  %s1038_s7 = sld [smem:[#allocation5_spill]] }
 0x1c8   : > { %p16_p10 = scmp.ge.s32.totalorder %s19_s26, 4   ;;  %s1039_s21 = smov %s825_s22 }
 0x1c9   : > { %s1040_s22 = smov %s829_s23  ;;  %s1041_s23 = smov %s935_s10 }
 0x1ca   : > { %s1042_s24 = smov %s837_s25  ;;  %18 = sbr.rel (!%p16_p10) target bundleno = 4 (0x4), region = 82 }
 0x1cd   : > { %s1043_s25 = smov %s1038_s7 }
 0x1cf   :  { %546 = vsyncpa [#allocation3], 1 }
 0x1d0   :  { %548 = vsyncpa [#allocation3 + $0x1], 1 }

</bundles_post_ra>
